<compile_context>
chip_gen: v7x
topology: tpu7x:2x2x1
jax: 0.10.0
libtpu: 0.0.40
codegen_flags: <defaults>
</compile_context>

<pallas_src>
import jax
import jax.numpy as jnp
from jax.experimental import pallas as pl
from jax.experimental.pallas import tpu as pltpu

IN_FEATURES = 10
HIDDEN = 50
LANE = 128


def mlp_kernel(xT_ref, w1_ref, b1_ref, w2_ref, b2_ref, o_ref):
    """One batch tile, batch along lanes.

    xT_ref : (10, TILE_B)  inputs, features on sublanes, batch on lanes
    w1_ref : (50, 10)      fc1 weight (PyTorch layout)
    b1_ref : (50, 1)       fc1 bias as a column
    w2_ref : (50, 1)       fc2 weight as a column
    b2_ref : (1, 1)        fc2 bias
    o_ref  : (1, TILE_B)   sigmoid output (lane-dense store)
    """
    # Layer 1: (50,10) @ (10,TILE_B) -> (50,TILE_B) on the MXU; bias + ReLU on VPU.
    h = jnp.dot(w1_ref[...], xT_ref[...], preferred_element_type=jnp.float32)
    h = jnp.maximum(h + b1_ref[...], 0.0)
    # Layer 2 is an N=1 matvec: VPU multiply + cross-sublane (XLU) reduce,
    # avoiding a wasteful (TILE_B,50)@(50,1) MXU matmul.
    z = jnp.sum(h * w2_ref[...], axis=0, keepdims=True) + b2_ref[...]
    # Sigmoid: exp executes in the otherwise-idle EUP slot; exact divide for accuracy.
    o_ref[...] = (1.0 / (1.0 + jnp.exp(-z))).astype(o_ref.dtype)


def simple_nn_forward(x, w1, b1, w2, b2, *, tile_b=1024):
    """Forward pass of SimpleNN.

    x : (B, 10) float32 — same layout as PyTorch nn.Linear input.
    Params in PyTorch layout: w1 (50,10), b1 (50,), w2 (1,50), b2 (1,).
    Returns (B, 1) float32.
    """
    B, F = x.shape
    assert F == IN_FEATURES and w1.shape == (HIDDEN, IN_FEATURES)

    # Batch tile: multiple of 128 lanes; shrink for small batches.
    # tile_b=1024 keeps the per-step footprint tiny (~250 KiB double-buffered),
    # well inside the scoped-VMEM default on v5e/v6e/v7x.
    b_aligned = pl.cdiv(B, LANE) * LANE
    tile_b = min(tile_b, b_aligned)
    tile_b = pl.cdiv(tile_b, LANE) * LANE
    B_pad = pl.cdiv(B, tile_b) * tile_b
    grid_b = B_pad // tile_b

    # Wrapper-side layout plumbing: pad + transpose to batch-in-lanes.
    x_pad = jnp.pad(x.astype(jnp.float32), ((0, B_pad - B), (0, 0)))
    xT = x_pad.T                                         # (10, B_pad)
    w1f = w1.astype(jnp.float32)                         # (50, 10)
    b1c = b1.reshape(HIDDEN, 1).astype(jnp.float32)      # (50, 1)
    w2c = w2.reshape(1, HIDDEN).T.astype(jnp.float32)    # (50, 1)
    b2c = b2.reshape(1, 1).astype(jnp.float32)           # (1, 1)

    flops = int(B_pad) * (2 * IN_FEATURES * HIDDEN + 2 * HIDDEN)
    bytes_accessed = 4 * (int(B_pad) * (IN_FEATURES + 1)
                          + HIDDEN * IN_FEATURES + 2 * HIDDEN + 1)

    out_t = pl.pallas_call(
        mlp_kernel,
        out_shape=jax.ShapeDtypeStruct((1, B_pad), jnp.float32),
        grid_spec=pltpu.PrefetchScalarGridSpec(
            num_scalar_prefetch=0,
            grid=(grid_b,),
            in_specs=[
                # x tile marches along the batch axis...
                pl.BlockSpec((IN_FEATURES, tile_b), lambda i: (0, i)),
                # ...while the (tiny) weights stay VMEM-resident.
                pl.BlockSpec((HIDDEN, IN_FEATURES), lambda i: (0, 0)),
                pl.BlockSpec((HIDDEN, 1), lambda i: (0, 0)),
                pl.BlockSpec((HIDDEN, 1), lambda i: (0, 0)),
                pl.BlockSpec((1, 1), lambda i: (0, 0)),
            ],
            out_specs=pl.BlockSpec((1, tile_b), lambda i: (0, i)),
        ),
        compiler_params=pltpu.CompilerParams(
            dimension_semantics=("parallel",),
        ),
        cost_estimate=pl.CostEstimate(
            flops=flops,
            transcendentals=int(B_pad),
            bytes_accessed=bytes_accessed,
        ),
    )(xT, w1f, b1c, w2c, b2c)

    # Back to PyTorch-style (B, 1).
    return out_t[0, :B].reshape(B, 1)


def init_params(key):
    # Deterministic init mimicking PyTorch Linear (uniform in +/- 1/sqrt(fan_in)),
    # stored in PyTorch layout: weight (out_features, in_features).
    k1, k2, k3, k4 = jax.random.split(key, 4)
    bound1 = 1.0 / jnp.sqrt(10.0)
    bound2 = 1.0 / jnp.sqrt(50.0)
    w1 = jax.random.uniform(k1, (HIDDEN, IN_FEATURES), jnp.float32, -bound1, bound1)
    b1 = jax.random.uniform(k2, (HIDDEN,), jnp.float32, -bound1, bound1)
    w2 = jax.random.uniform(k3, (1, HIDDEN), jnp.float32, -bound2, bound2)
    b2 = jax.random.uniform(k4, (1,), jnp.float32, -bound2, bound2)
    return w1, b1, w2, b2


if __name__ == "__main__":
    key = jax.random.PRNGKey(0)
    kx, kp = jax.random.split(key)
    batch = 8
    x = jax.random.normal(kx, (batch, IN_FEATURES), jnp.float32)
    w1, b1, w2, b2 = init_params(kp)

    out = simple_nn_forward(x, w1, b1, w2, b2)
    jax.block_until_ready(out)

    # Reference check in plain JAX (PyTorch semantics: x @ W.T + b).
    ref = jax.nn.sigmoid(jnp.maximum(x @ w1.T + b1, 0.0) @ w2.T + b2)
    assert out.shape == (batch, 1)
    assert jnp.allclose(out, ref, atol=1e-4, rtol=1e-4), "mismatch vs reference"

    print("KERNEL_OK")
</pallas_src>

<mosaic_0001>
module attributes {stable_mosaic.version = 11 : i64} {
  func.func @mlp_kernel(%arg0: i32, %arg1: memref<10x128xf32, #tpu.memory_space<vmem>>, %arg2: memref<50x10xf32, #tpu.memory_space<vmem>>, %arg3: memref<50x1xf32, #tpu.memory_space<vmem>>, %arg4: memref<50x1xf32, #tpu.memory_space<vmem>>, %arg5: memref<1x1xf32, #tpu.memory_space<vmem>>, %arg6: memref<1x128xf32, #tpu.memory_space<vmem>>) attributes {dimension_semantics = [#tpu.dimension_semantics<parallel>], iteration_bounds = array<i64: 1>, scalar_prefetch = 0 : i64, scratch_operands = 0 : i64, tpu.core_type = #tpu.core_type<tc>, window_params = [{transform_indices = @transform_0, window_bounds = array<i64: 10, 128>}, {pipeline_mode = #tpu.pipeline_mode<synchronous>, transform_indices = @transform_1, window_bounds = array<i64: 50, 10>}, {pipeline_mode = #tpu.pipeline_mode<synchronous>, transform_indices = @transform_2, window_bounds = array<i64: 50, 1>}, {pipeline_mode = #tpu.pipeline_mode<synchronous>, transform_indices = @transform_3, window_bounds = array<i64: 50, 1>}, {pipeline_mode = #tpu.pipeline_mode<synchronous>, transform_indices = @transform_4, window_bounds = array<i64: 1, 1>}, {transform_indices = @transform_5, window_bounds = array<i64: 1, 128>}]} {
    %c0 = arith.constant 0 : index
    %c0_0 = arith.constant 0 : index
    %0 = vector.load %arg2[%c0, %c0_0] : memref<50x10xf32, #tpu.memory_space<vmem>>, vector<50x10xf32>
    %c0_1 = arith.constant 0 : index
    %c0_2 = arith.constant 0 : index
    %1 = vector.load %arg1[%c0_1, %c0_2] : memref<10x128xf32, #tpu.memory_space<vmem>>, vector<10x128xf32>
    %cst = arith.constant dense<0.000000e+00> : vector<50x128xf32>
    %2 = tpu.matmul %0, %1, %cst {dimension_numbers = #tpu.dot_dimension_numbers<[1], [0], [0], [1], [0, 0, 1, 1], [], []>} : vector<50x10xf32>, vector<10x128xf32>, vector<50x128xf32> -> vector<50x128xf32>
    %c0_3 = arith.constant 0 : index
    %c0_4 = arith.constant 0 : index
    %3 = vector.load %arg3[%c0_3, %c0_4] : memref<50x1xf32, #tpu.memory_space<vmem>>, vector<50x1xf32>
    %4 = vector.broadcast %3 : vector<50x1xf32> to vector<50x128xf32>
    %5 = arith.addf %2, %4 : vector<50x128xf32>
    %cst_5 = arith.constant 0.000000e+00 : f32
    %6 = vector.broadcast %cst_5 : f32 to vector<50x128xf32>
    %7 = arith.maximumf %5, %6 : vector<50x128xf32>
    %c0_6 = arith.constant 0 : index
    %c0_7 = arith.constant 0 : index
    %8 = vector.load %arg4[%c0_6, %c0_7] : memref<50x1xf32, #tpu.memory_space<vmem>>, vector<50x1xf32>
    %9 = vector.broadcast %8 : vector<50x1xf32> to vector<50x128xf32>
    %10 = arith.mulf %7, %9 : vector<50x128xf32>
    %cst_8 = arith.constant dense<0.000000e+00> : vector<128xf32>
    %11 = vector.multi_reduction <add>, %10, %cst_8 [0] : vector<50x128xf32> to vector<128xf32>
    %12 = vector.shape_cast %11 : vector<128xf32> to vector<1x128xf32>
    %c0_9 = arith.constant 0 : index
    %c0_10 = arith.constant 0 : index
    %13 = vector.load %arg5[%c0_9, %c0_10] : memref<1x1xf32, #tpu.memory_space<vmem>>, vector<1x1xf32>
    %14 = vector.broadcast %13 : vector<1x1xf32> to vector<1x128xf32>
    %15 = arith.addf %12, %14 : vector<1x128xf32>
    %cst_11 = arith.constant 0.000000e+00 : f32
    %16 = vector.broadcast %cst_11 : f32 to vector<1x128xf32>
    %17 = arith.subf %16, %15 : vector<1x128xf32>
    %18 = math.exp %17 : vector<1x128xf32>
    %cst_12 = arith.constant 1.000000e+00 : f32
    %19 = vector.broadcast %cst_12 : f32 to vector<1x128xf32>
    %20 = arith.addf %19, %18 : vector<1x128xf32>
    %cst_13 = arith.constant 1.000000e+00 : f32
    %21 = vector.broadcast %cst_13 : f32 to vector<1x128xf32>
    %22 = arith.divf %21, %20 : vector<1x128xf32>
    %c0_14 = arith.constant 0 : index
    %c0_15 = arith.constant 0 : index
    %23 = vector.load %arg6[%c0_14, %c0_15] : memref<1x128xf32, #tpu.memory_space<vmem>>, vector<1x128xf32>
    tpu.vector_store %arg6[%c0_14, %c0_15], %22 {strides = array<i32>} : memref<1x128xf32, #tpu.memory_space<vmem>>, vector<1x128xf32>,
    return
  }
  func.func @transform_0(%arg0: i32) -> (i32, i32) {
    %c0_i32 = arith.constant 0 : i32
    %c0_i32_0 = arith.constant 0 : i32
    return %c0_i32, %arg0 : i32, i32
  }
  func.func @transform_1(%arg0: i32) -> (i32, i32) {
    %c0_i32 = arith.constant 0 : i32
    %c0_i32_0 = arith.constant 0 : i32
    %c0_i32_1 = arith.constant 0 : i32
    return %c0_i32, %c0_i32_0 : i32, i32
  }
  func.func @transform_2(%arg0: i32) -> (i32, i32) {
    %c0_i32 = arith.constant 0 : i32
    %c0_i32_0 = arith.constant 0 : i32
    %c0_i32_1 = arith.constant 0 : i32
    return %c0_i32, %c0_i32_0 : i32, i32
  }
  func.func @transform_3(%arg0: i32) -> (i32, i32) {
    %c0_i32 = arith.constant 0 : i32
    %c0_i32_0 = arith.constant 0 : i32
    %c0_i32_1 = arith.constant 0 : i32
    return %c0_i32, %c0_i32_0 : i32, i32
  }
  func.func @transform_4(%arg0: i32) -> (i32, i32) {
    %c0_i32 = arith.constant 0 : i32
    %c0_i32_0 = arith.constant 0 : i32
    %c0_i32_1 = arith.constant 0 : i32
    return %c0_i32, %c0_i32_0 : i32, i32
  }
  func.func @transform_5(%arg0: i32) -> (i32, i32) {
    %c0_i32 = arith.constant 0 : i32
    %c0_i32_0 = arith.constant 0 : i32
    return %c0_i32, %arg0 : i32, i32
  }
}

</mosaic_0001>

<bundles_post_ra>
// kernel: tpu_custom_call.1
= control target key start
LH: loop header
LB: loop body
LE: loop exit
PB: predicated region body
PF: predicated region fallthrough
CT: control target
= control target key end

     0   :  { %s521_s0 = inlined_call_operand.vmem [shape: f32[10,128], index: 0, kind: input, shape index: {}]   ;;  %s522_s1 = inlined_call_operand.vmem [shape: f32[50,10], index: 1, kind: input, shape index: {}]   ;;  %s523_s2 = inlined_call_operand.vmem [shape: f32[50,1], index: 2, kind: input, shape index: {}]   ;;  %s524_s3 = inlined_call_operand.vmem [shape: f32[50,1], index: 3, kind: input, shape index: {}]   ;;  %s525_s4 = inlined_call_operand.<no memory space> [shape: f32[1,1], index: 4, kind: input, shape index: {}]   ;;  %s526_s5 = inlined_call_operand.hbm [shape: f32[1,128], index: 5, kind: output, shape index: {}]  }
   0x1   :  { %v10_v0 = vstv %s525_s4 }
   0x2   :  { %11 = vst [vmem:[#allocation2] sm:$0x1] %v10_v0 }
   0x3   :  { %v30_v1 = vld [vmem:[%s521_s0] sm:$0xff]  ;;  %v31_v2 = vld [vmem:[%s521_s0 + $0x8] sm:$0x3]  ;;  %vm96_vm0 = vcmask 1041408   ;;  %v385_v3 = vmov 0.0|0.0   ;;  %vm386_vm1 = vmmov 1  }
   0x4   :  { %343 = vmatprep.subr.bf16.mxu0 %v385_v3  ;;  %347 = vmatprep.subr.bf16.mxu1 %v385_v3  ;;  %v344_v4 = vpack.c.bf16 %v31_v2, %v30_v1  ;;  %vm345_vm2 = vmpackc.low %vm96_vm0, %vm386_vm1  ;;  %vm387_vm3 = vmmov 0   ;;  %v388_v5 = vmov 0.0   ;;  %v23_v6 = vld [vmem:[%s522_s1] sm:$0xff]  ;;  %vm74_vm4 = vcmask 80896   ;;  %v34_v10 = vld [vmem:[%s523_s2 + $0x10] sm:$0xff] }
   0x5   :  { %322 = vmatprep.mubr.msk.f32.mxu0 %vm387_vm3, %v388_v5  ;;  %334 = vmatprep.mubr.msk.f32.mxu1 %vm387_vm3, %v388_v5  ;;  %v27_v7 = vld [vmem:[%s522_s1 + $0x20] sm:$0xff]  ;;  %v389_v9 = vmov 0   ;;  %v33_v11 = vld [vmem:[%s523_s2 + $0x8] sm:$0xff]  ;;  %v35_v12 = vld [vmem:[%s523_s2 + $0x18] sm:$0xff] }
   0x6   :  { %346 = vmatpush3.bf16.msk.msra.mxu0 %vm345_vm2, %v344_v4  ;;  %348 = vmatpush3.bf16.msk.msra.mxu1 %vm345_vm2, %v344_v4  ;;  %v32_v8 = vld [vmem:[%s523_s2] sm:$0xff]  ;;  %v24_v13 = vld [vmem:[%s522_s1 + $0x8] sm:$0xff] }
   0x7   :  { %355 = vset.pattern.permute.xlu0 %v389_v9  ;;  %356 = vset.pattern.permute.xlu1 %v389_v9  ;;  %v28_v14 = vld [vmem:[%s522_s1 + $0x28] sm:$0xff] }
   0x8   :  { %41 = vperm.xlu0 %355, %v32_v8   ;;  %51 = vperm.xlu1 %356, %v34_v10  }
   0x9   :  { %323 = vmatmul.mubr.msk.f32.vlgmr.msra.gmra.mrb[0].mxu0 %vm74_vm4, %v23_v6  ;;  %335 = vmatmul.mubr.msk.f32.vlgmr.msra.gmra.mrb[0].mxu1 %vm74_vm4, %v27_v7 }
   0xa   :  { %325 = vmatprep.mubr.msk.f32.mxu0 %vm387_vm3, %v388_v5  ;;  %337 = vmatprep.mubr.msk.f32.mxu1 %vm387_vm3, %v388_v5 }
   0xb   :  { %12 = vsyncpa [#allocation4], 0  ;;  %v207_v15 = vld [vmem:[%s524_s3] sm:$0xff]  ;;  %v208_v16 = vld [vmem:[%s524_s3 + $0x8] sm:$0xff] }
   0xc   :  { %46 = vperm.xlu0 %355, %v33_v11   ;;  %56 = vperm.xlu1 %356, %v35_v12   ;;  %v25_v17 = vld [vmem:[%s522_s1 + $0x10] sm:$0xff]  ;;  %v36_v19 = vld [vmem:[%s523_s2 + $0x20] sm:$0xff]  ;;  %v26_v21 = vld [vmem:[%s522_s1 + $0x18] sm:$0xff] }
   0xd   :  { %326 = vmatmul.mubr.msk.f32.gmra.mrb[2].mxu0 %vm74_vm4, %v24_v13  ;;  %338 = vmatmul.mubr.msk.f32.gmra.mrb[2].mxu1 %vm74_vm4, %v28_v14  ;;  %v29_v18 = vld [vmem:[%s522_s1 + $0x30] sm:$0x3]  ;;  %v37_v22 = vld [vmem:[%s523_s2 + $0x28] sm:$0xff]  ;;  %v210_v23 = vld [vmem:[%s524_s3 + $0x18] sm:$0xff] }
   0xe   :  { %328 = vmatprep.mubr.msk.f32.mxu0 %vm387_vm3, %v388_v5  ;;  %340 = vmatprep.mubr.msk.f32.mxu1 %vm387_vm3, %v388_v5  ;;  %v209_v20 = vld [vmem:[%s524_s3 + $0x10] sm:$0xff]  ;;  %v211_v25 = vld [vmem:[%s524_s3 + $0x20] sm:$0xff]  ;;  %v212_v26 = vld [vmem:[%s524_s3 + $0x28] sm:$0xff] }
   0xf   :  { %v38_v24 = vld [vmem:[%s523_s2 + $0x30] sm:$0x3]  ;;  %v269_v28 = vld [vmem:[#allocation2] sm:$0x1]  ;;  %s390_s2 = smov [#allocation3]  }
  0x10   :  { %216 = vperm.xlu0 %355, %v207_v15   ;;  %221 = vperm.xlu1 %356, %v208_v16   ;;  %v213_v27 = vld [vmem:[%s524_s3 + $0x30] sm:$0x3]  ;;  %s293_s3 = sshll.u32 %s390_s2, 4  ;;  %s294_s3 = int_to_ptr.vmem [resolvable:$true] %s293_s3 }
  0x11   :  { %329 = vmatmul.mubr.msk.f32.gmra.mrb[4].mxu0 %vm74_vm4, %v25_v17  ;;  %341 = vmatmul.mubr.msk.f32.gmra.mrb[4].mxu1 %vm74_vm4, %v29_v18  ;;  %s361_s11 = scalar_lea.vmem %s294_s3, 16  ;;  %s365_s12 = scalar_lea.vmem %s294_s3, 32 }
  0x12   :  { %331 = vmatprep.mubr.msk.f32.mxu0 %vm387_vm3, %v388_v5  ;;  %p362_p0 = scmp.ne.s32.totalorder %s294_s3, %s361_s11  ;;  %p366_p1 = scmp.lt.s32.totalorder %s294_s3, %s294_s3 }
  0x13   :  { %p367_p2 = scmp.lt.s32.totalorder %s365_s12, %s361_s11 }
  0x14   :  { %61 = vperm.xlu0 %355, %v36_v19   ;;  %226 = vperm.xlu1 %356, %v209_v20   ;;  %v275_v20 = vlaneseq }
  0x15   :  { %332 = vmatmul.mubr.msk.f32.gmra.mrb[6].mxu0 %vm74_vm4, %v26_v21  ;;  %p368_p3 = por %p367_p2, %p366_p1 }
  0x17   :  { %p369_p4 = pnand %p368_p3, %p362_p0 }
  0x18   :  { %66 = vperm.xlu0 %355, %v37_v22   ;;  %231 = vperm.xlu1 %356, %v210_v23   ;;  %v276_v23 = vshrl.u32 %v275_v20, 7 }
  0x1c   :  { %71 = vperm.xlu0 %355, %v38_v24   ;;  %236 = vperm.xlu1 %356, %v211_v25  }
  0x20   :  { %241 = vperm.xlu0 %355, %v212_v26   ;;  %246 = vperm.xlu1 %356, %v213_v27   ;;  %v277_v26 = vsub.s32 0, %v276_v23 }
  0x24   :  { %272 = vperm.xlu0 %355, %v269_v28  }
  0x87   :  { %v42_v29 = vpop.permute.xlu0 %41  ;;  %v52_v30 = vpop.permute.xlu1 %51 }
  0x8b   :  { %v47_v31 = vpop.permute.xlu0 %46  ;;  %v57_v32 = vpop.permute.xlu1 %56 }
  0x8f   :  { %v217_v33 = vpop.permute.xlu0 %216  ;;  %v222_v34 = vpop.permute.xlu1 %221 }
  0x93   :  { %v62_v35 = vpop.permute.xlu0 %61  ;;  %v227_v36 = vpop.permute.xlu1 %226 }
  0x97   :  { %v67_v42 = vpop.permute.xlu0 %66  ;;  %v232_v49 = vpop.permute.xlu1 %231 }
  0x9b   :  { %v72_v58 = vpop.permute.xlu0 %71  ;;  %v237_v0 = vpop.permute.xlu1 %236 }
  0x9f   :  { %v247_v11 = vpop.permute.xlu1 %246  ;;  %v242_v14 = vpop.permute.xlu0 %241 }
  0xa3   :  { %v273_v28 = vpop.permute.xlu0 %272 }
  0xdc   :  { %v166_v37 = vpop.f32.mrb[0].mxu0  ;;  %v186_v38 = vpop.f32.mrb[0].mxu1 }
  0xdd   :  { %v167_v39 = vadd.f32 %v166_v37, %v42_v29  ;;  %v324_v40 = vpop.f32.mrb[1].mxu0  ;;  %v336_v41 = vpop.f32.mrb[1].mxu1  ;;  %v187_v59 = vadd.f32 %v186_v38, %v62_v35 }
  0xdf   :  { %v200_v45 = vmax.f32 %v167_v39, 0.0  ;;  %v204_v5 = vmax.f32 %v187_v59, 0.0 }
  0xe0   :  { %v171_v43 = vpop.f32.mrb[2].mxu0  ;;  %v191_v44 = vpop.f32.mrb[2].mxu1 }
  0xe1   :  { %v172_v46 = vadd.f32 %v171_v43, %v47_v31  ;;  %v327_v47 = vpop.f32.mrb[3].mxu0  ;;  %v339_v48 = vpop.f32.mrb[3].mxu1  ;;  %v249_v53 = vmul.f32 %v217_v33, %v200_v45  ;;  %v192_v1 = vadd.f32 %v191_v44, %v67_v42  ;;  %v253_v12 = vmul.f32 %v237_v0, %v204_v5 }
  0xe3   :  { %v201_v50 = vmax.f32 %v172_v46, 0.0  ;;  %v205_v9 = vmax.f32 %v192_v1, 0.0 }
  0xe4   :  { %v176_v51 = vpop.f32.mrb[4].mxu0  ;;  %v196_v52 = vpop.f32.mrb[4].mxu1 }
  0xe5   :  { %v250_v54 = vmul.f32 %v222_v34, %v201_v50  ;;  %v177_v55 = vadd.f32 %v176_v51, %v52_v30  ;;  %v330_v56 = vpop.f32.mrb[5].mxu0  ;;  %v342_v57 = vpop.f32.mrb[5].mxu1  ;;  %v197_v62 = vadd.f32 %v196_v52, %v72_v58  ;;  %v254_v16 = vmul.f32 %v242_v14, %v205_v9 }
  0xe6   :  { %v278_v30 = vrot.slane %v273_v28, %v277_v26 }
  0xe7   :  { %v256_v60 = vadd.f32 %v250_v54, %v249_v53  ;;  %v202_v61 = vmax.f32 %v177_v55, 0.0  ;;  %v206_v8 = vmax.f32 %v197_v62, 0.0 }
  0xe8   :  { %v181_v63 = vpop.f32.mrb[6].mxu0 }
  0xe9   :  { %v251_v2 = vmul.f32 %v227_v36, %v202_v61  ;;  %v182_v3 = vadd.f32 %v181_v63, %v57_v32  ;;  %v333_v4 = vpop.f32.mrb[7].mxu0  ;;  %v255_v15 = vmul.f32 %v247_v11, %v206_v8 }
  0xeb   :  { %v257_v6 = vadd.f32 %v256_v60, %v251_v2  ;;  %v203_v7 = vmax.f32 %v182_v3, 0.0  ;;  %v261_v19 = vsel %vm96_vm0, %v255_v15, 0.0 }
  0xed   :  { %v252_v10 = vmul.f32 %v232_v49, %v203_v7 }
  0xef   :  { %v258_v13 = vadd.f32 %v257_v6, %v252_v10 }
  0xf1   :  { %v259_v17 = vadd.f32 %v258_v13, %v253_v12 }
  0xf3   :  { %v260_v18 = vadd.f32 %v259_v17, %v254_v16 }
  0xf5   :  { %v262_v21 = vadd.f32 %v261_v19, %v260_v18 }
  0xf7   :  { %v263_v22 = vrot.slane %v262_v21, 4 }
  0xf9   :  { %v264_v24 = vadd.f32 %v263_v22, %v262_v21 }
  0xfb   :  { %v265_v25 = vrot.slane %v264_v24, 2 }
  0xfd   :  { %v266_v27 = vadd.f32 %v265_v25, %v264_v24 }
  0xff   :  { %v267_v29 = vrot.slane %v266_v27, 1 }
 0x101   :  { %v268_v31 = vadd.f32 %v267_v29, %v266_v27 }
 0x103   :  { %v279_v32 = vadd.f32 %v278_v30, %v268_v31 }
 0x105   :  { %v280_v33 = vsub.f32 0.0, %v279_v32 }
 0x107   :  { %v281_v34 = vmul.f32 1.442695, %v280_v33 }
 0x109   :  { %357 = vpow2.f32 %v281_v34 }
 0x113   :  { %v358_v35 = vpop.eup %357 }
 0x114   :  { %v283_v36 = vadd.f32 1.0, %v358_v35 }
 0x116   :  { %359 = vrcp.f32 %v283_v36 }
 0x120   :  { %v360_v37 = vpop.eup %359 }
 0x121   :  { %286 = vst [vmem:[#allocation3] sm:$0x1] %v360_v37 }
 0x122   :  { %372 = shalt.err (!%p369_p4)
}
 0x123   :  { %s373_s15 = scalar_lea.hbm %s526_s5, 16 }
 0x124   :  { %p374_p5 = scmp.ne.s32.totalorder %s526_s5, %s373_s15  ;;  %p377_p6 = scmp.lt.u32.totalorder %s373_s15, %s526_s5 }
 0x126   :  { %p379_p7 = pnand %p377_p6, %p374_p5 }
 0x128   :  { %382 = shalt.err (!%p379_p7)
}
 0x129   :  { %296 = dma.vmem_to_hbm [thread:$0]  %s294_s3, 16, %s526_s5, [#allocation4]  }
 0x12a   :  { %383 = dma.done.wait [#allocation4], 16  }
 0x12b   :  { %384 = vsyncadd [#allocation4], 4294967280 }
 0x12c   :  { %300 = vsyncpa [#allocation4], 1 }

</bundles_post_ra>
